<compile_context>
chip_gen: v7x
topology: tpu7x:2x2x1
jax: 0.10.0
libtpu: 0.0.40
codegen_flags: <defaults>
</compile_context>

<pallas_src>
import jax
import jax.numpy as jnp
from jax.experimental import pallas as pl
from jax.experimental.pallas import tpu as pltpu


# ---------------------------------------------------------------------------
# Tunables.
# ---------------------------------------------------------------------------
_MAX_LANE = 16384            # cap on the flattened trailing dim of the 2D view
_CHUNK_MIN_BYTES = 1 << 20   # split into multiple DMAs only above 1 MiB
_MAX_CHUNKS = 4              # at most 4 concurrent DMAs


def _make_identity_kernel(chunks):
    """Build the kernel for a static list of (row_start, row_size) chunks."""

    def kernel(x_hbm, o_hbm, sem):
        if len(chunks) == 1:
            # Single contiguous HBM->HBM DMA of the whole array.
            cp = pltpu.make_async_copy(x_hbm, o_hbm, sem.at[0])
            cp.start()
            cp.wait()
        else:
            # Issue all chunk DMAs (contiguous row ranges), then wait on all.
            copies = []
            for idx, (start, size) in enumerate(chunks):
                cp = pltpu.make_async_copy(
                    x_hbm.at[pl.ds(start, size), :],
                    o_hbm.at[pl.ds(start, size), :],
                    sem.at[idx],
                )
                cp.start()
                copies.append(cp)
            for cp in copies:
                cp.wait()

    return kernel


def _choose_2d_view(total):
    """Pick a (rows, lane) factorization of the flat element count."""
    if total % 128 == 0:
        lane = 128
        while lane * 2 <= _MAX_LANE and total % (lane * 2) == 0:
            lane *= 2
        return total // lane, lane
    # Ragged total: one contiguous (1, total) region. The DMA engine does not
    # care about lane alignment (no VMEM / vector stores are involved).
    return 1, total


def identity_op(x, *args, **kwargs):
    """Pallas equivalent of Megatron IdentityOp.forward: returns x unchanged.

    Extra *args / **kwargs are accepted and ignored, matching the PyTorch
    module's signature.
    """
    orig_shape = x.shape
    dtype = x.dtype
    itemsize = jnp.dtype(dtype).itemsize
    total = x.size

    if total == 0:
        # Nothing to copy; a zero-sized pallas_call is pointless.
        return x

    rows, lane = _choose_2d_view(total)
    x2d = x.reshape(rows, lane)

    # Static chunking along rows (contiguous HBM ranges in the row-major view).
    total_bytes = total * itemsize
    nchunks = min(_MAX_CHUNKS, rows) if total_bytes >= _CHUNK_MIN_BYTES else 1
    base, rem = divmod(rows, nchunks)
    chunks, start = [], 0
    for c in range(nchunks):
        size = base + (1 if c < rem else 0)
        chunks.append((start, size))
        start += size

    out2d = pl.pallas_call(
        _make_identity_kernel(chunks),
        out_shape=jax.ShapeDtypeStruct((rows, lane), dtype),
        # Raw HBM refs on both sides: no auto-DMA, no VMEM staging.
        in_specs=[pl.BlockSpec(memory_space=pl.ANY)],
        out_specs=pl.BlockSpec(memory_space=pl.ANY),
        scratch_shapes=[pltpu.SemaphoreType.DMA((len(chunks),))],
        cost_estimate=pl.CostEstimate(
            flops=0,
            transcendentals=0,
            bytes_accessed=2 * total_bytes,
        ),
    )(x2d)

    return out2d.reshape(orig_shape)


if __name__ == "__main__":
    key = jax.random.PRNGKey(0)

    # Small generic tensor passed through IdentityOp:
    # batch=2, channels=4, spatial=16x16.
    x = jax.random.normal(key, (2, 4, 16, 16), dtype=jnp.float32)
    y = jax.block_until_ready(identity_op(x))
    assert y.shape == x.shape, (y.shape, x.shape)
    assert y.dtype == x.dtype, (y.dtype, x.dtype)
    assert bool(jnp.all(y == x)), "identity output mismatch"

    # Ragged (non-128-divisible) shape.
    x2 = jax.random.normal(key, (3, 7, 5), dtype=jnp.float32)
    y2 = jax.block_until_ready(identity_op(x2))
    assert bool(jnp.all(y2 == x2)), "ragged identity mismatch"

    # bf16 input with extra args/kwargs (ignored, matching the torch module).
    x3 = jax.random.normal(key, (8, 32), dtype=jnp.bfloat16)
    y3 = jax.block_until_ready(identity_op(x3, "extra_arg", some_kwarg=1))
    assert y3.dtype == x3.dtype and bool(jnp.all(y3 == x3)), "bf16 identity mismatch"

    # 2 MiB input exercises the multi-DMA (chunked) path.
    x4 = jax.random.normal(key, (1024, 512), dtype=jnp.float32)
    y4 = jax.block_until_ready(identity_op(x4))
    assert bool(jnp.all(y4 == x4)), "chunked identity mismatch"

    print("KERNEL_OK")
</pallas_src>

<mosaic_0001>
module attributes {stable_mosaic.version = 11 : i64} {
  func.func @kernel(%arg0: memref<1x2048xf32, #tpu.memory_space<any>>, %arg1: memref<1x2048xf32, #tpu.memory_space<any>>, %arg2: memref<1x!tpu.dma_semaphore, #tpu.memory_space<semaphore_mem>>) attributes {dimension_semantics = [], scalar_prefetch = 0 : i64, scratch_operands = 1 : i64, tpu.core_type = #tpu.core_type<tc>} {
    %c0_i32 = arith.constant 0 : i32
    %0 = tpu.memref_slice %arg2[%c0_i32] : memref<1x!tpu.dma_semaphore, #tpu.memory_space<semaphore_mem>> -> memref<1x!tpu.dma_semaphore, #tpu.memory_space<semaphore_mem>>
    %1 = tpu.memref_squeeze %0 : memref<1x!tpu.dma_semaphore, #tpu.memory_space<semaphore_mem>> -> memref<!tpu.dma_semaphore, #tpu.memory_space<semaphore_mem>>
    tpu.enqueue_dma source(%arg0 : memref<1x2048xf32, #tpu.memory_space<any>>) target(%arg1 : memref<1x2048xf32, #tpu.memory_space<any>>) target_semaphore(%1 : memref<!tpu.dma_semaphore, #tpu.memory_space<semaphore_mem>>)
    %c0_i32_0 = arith.constant 0 : i32
    %2 = tpu.memref_slice %arg2[%c0_i32_0] : memref<1x!tpu.dma_semaphore, #tpu.memory_space<semaphore_mem>> -> memref<1x!tpu.dma_semaphore, #tpu.memory_space<semaphore_mem>>
    %3 = tpu.memref_squeeze %2 : memref<1x!tpu.dma_semaphore, #tpu.memory_space<semaphore_mem>> -> memref<!tpu.dma_semaphore, #tpu.memory_space<semaphore_mem>>
    tpu.wait_dma2 semaphore(%3 : memref<!tpu.dma_semaphore, #tpu.memory_space<semaphore_mem>>) src(%arg0 : memref<1x2048xf32, #tpu.memory_space<any>>) dst(%arg1 : memref<1x2048xf32, #tpu.memory_space<any>>)
    return
  }
}

</mosaic_0001>

<bundles_post_ra>
// kernel: tpu_custom_call.1
= control target key start
LH: loop header
LB: loop body
LE: loop exit
PB: predicated region body
PF: predicated region fallthrough
CT: control target
= control target key end

     0   :  { %s34_s6 = smov [#allocation2]   ;;  %s35_s7 = smov [#allocation3]   ;;  %s53_s0 = inlined_call_operand.hbm [shape: f32[1,2048], index: 0, kind: input, shape index: {}]   ;;  %s54_s1 = inlined_call_operand.hbm [shape: f32[1,2048], index: 1, kind: output, shape index: {}]  }
   0x1   :  { %s36_s8 = smov 0  }
   0x2   :  { %18 = dma.general %s53_s0, 256, %s54_s1, %s34_s6, %s35_s7, [#allocation4], %s36_s8, 0  }
   0x3   :  { %32 = dma.done.wait [#allocation2], 256 }
   0x4   :  { %33 = vsyncadd [#allocation2], 4294967040 }
   0x5   :  { %22 = vsyncmov [#allocation2] }
   0x8   :  { %s23_s13 = vpop.sfrf %22 }
   0x9   :  { %p28_p0 = scmp.ne.s32.totalorder %s23_s13, 0 }
   0xb   :  { %27 = shalt.err (%p28_p0)  }

</bundles_post_ra>
